<compile_context>
chip_gen: v5e
topology: v5e:2x2
jax: 0.10.0
libtpu: 0.0.40
codegen_flags: <defaults>
</compile_context>

<pallas_src>
import functools

import jax
import jax.numpy as jnp
from jax import lax
from jax.experimental import pallas as pl
from jax.experimental.pallas import tpu as pltpu


def _round_up(x, m):
    return -(-x // m) * m


def _vmem_capacity_bytes():
    """Per-core VMEM capacity; conservative (v7x-sized) fallback if the query fails."""
    try:
        cap = int(getattr(pltpu.get_tpu_info(), "vmem_capacity_bytes", 0))
        if cap > 0:
            return min(cap, 128 * 1024 * 1024)
    except Exception:
        pass
    return 64 * 1024 * 1024


def _pick_batch_tile(nrows, ncols, budget_bytes):
    """Largest row tile whose double-buffered inputs + elementwise temporaries fit.

    ncols is the in-kernel row width; VMEM stores it lane-padded to a multiple of 128.
    Prefers a tile that exactly divides nrows (no in-kernel row-validity mask)."""
    lane_cols = _round_up(ncols, 128)
    # 2 inputs x 2 pipeline buffers + ~10 full-tile f32 temporaries (x, e, denom, p, p^2,
    # iota/mask, ...) -- deliberately conservative so the Mosaic allocator never overflows.
    bytes_per_row = (2 * 2 + 10) * lane_cols * 4
    tb = max(8, (budget_bytes // bytes_per_row) // 8 * 8)
    if nrows <= tb:
        return nrows
    d = tb
    while d >= max(8, tb // 2):          # prefer a divisor of nrows: no masking needed
        if nrows % d == 0:
            return d
        d -= 8
    return tb


def _lerm_kernel(*refs, nrows, row_width, r_pack, tile_rows, need_mask):
    """Accumulate per-class sum(p) and sum(p^2) for the active branch of this grid step."""
    if r_pack > 1:
        smat_ref, ys_ref, yw_ref, a_ref, sq_ref = refs
    else:
        ys_ref, yw_ref, a_ref, sq_ref = refs
        smat_ref = None

    branch = pl.program_id(0)   # 0 = strong logits, 1 = weak logits (leading parallel axis)
    bt = pl.program_id(1)       # row-tile index (reduction axis, "arbitrary")

    @pl.when(bt == 0)
    def _init():                # per-branch output block acts as the resident accumulator
        a_ref[...] = jnp.zeros_like(a_ref)
        sq_ref[...] = jnp.zeros_like(sq_ref)

    def accumulate(x_ref):
        x = x_ref[...].astype(jnp.float32)                     # (tile_rows, row_width)
        # Max over the packed row (R original rows share it): softmax is invariant to any
        # per-segment constant, so this is exact up to exp underflow for segments sitting
        # ~88+ below the packed-row max (not reachable with sane classifier logits).
        m = jnp.max(x, axis=-1, keepdims=True)
        e = jnp.exp(x - m)
        if r_pack > 1:
            # Per-segment (per original row) sums broadcast back to every lane via a
            # block-diagonal 0/1 matmul on the otherwise-idle MXU.  HIGHEST precision keeps
            # the f32 operands exact; default could demote them to bf16.
            denom = jnp.dot(e, smat_ref[...],
                            precision=lax.Precision.HIGHEST,
                            preferred_element_type=jnp.float32)
            p = e / denom
        else:
            # One reciprocal per row instead of C divides (review item).
            denom = jnp.sum(e, axis=-1, keepdims=True)
            p = e * (1.0 / denom)
        if need_mask:
            # Only emitted when the tile does not divide the row count.  Rows beyond nrows
            # (Pallas-padded last tile) may hold garbage -> fully masked, never leaks.
            row = lax.broadcasted_iota(jnp.int32, p.shape, 0)
            p = jnp.where(bt * tile_rows + row < nrows, p, 0.0)
        pa = jnp.sum(p, axis=0, keepdims=True).reshape(1, 1, row_width)
        ps = jnp.sum(p * p, axis=0, keepdims=True).reshape(1, 1, row_width)
        a_ref[...] += jnp.broadcast_to(pa, a_ref.shape)
        sq_ref[...] += jnp.broadcast_to(ps, sq_ref.shape)

    @pl.when(branch == 0)
    def _strong():
        accumulate(ys_ref)

    @pl.when(branch == 1)
    def _weak():
        accumulate(yw_ref)


def lerm(y_strong, y, *, tb=None, pack=True):
    """LERM loss: 0.1 * branch(y_strong) + branch(y), branch = mean|row_norm(P^T P) - I|."""
    assert y_strong.shape == y.shape and y_strong.ndim == 2
    B, C = y_strong.shape

    # Lane packing: view (B, C) as (B/R, R*C) with R*C == 128 when C is small, C | 128 and
    # B is a multiple of R (a free row-major reshape -- no HBM copy, no padding).
    R = 1
    if pack and C < 128 and 128 % C == 0:
        r = 128 // C
        if B % r == 0 and B >= 8 * r:     # keep >=8 packed rows (aligned MXU / sublane tiles)
            R = r
    nrows, row_width = B // R, R * C
    ys2 = y_strong.reshape(nrows, row_width)
    yw2 = y.reshape(nrows, row_width)

    cap = _vmem_capacity_bytes()
    if tb is None:
        TB = _pick_batch_tile(nrows, row_width, (cap * 45) // 100)
    else:
        TB = min(int(tb), nrows)
        if TB < nrows:
            TB = max(8, (TB // 8) * 8)
        TB = min(TB, nrows)
    nbt = pl.cdiv(nrows, TB)
    need_mask = (nrows % TB) != 0

    kernel = functools.partial(_lerm_kernel, nrows=nrows, row_width=row_width,
                               r_pack=R, tile_rows=TB, need_mask=need_mask)

    operands = []
    in_specs = []
    if R > 1:
        lane = jnp.arange(row_width, dtype=jnp.int32)
        smat = (lane[:, None] // C == lane[None, :] // C).astype(jnp.float32)
        operands.append(smat)
        in_specs.append(pl.BlockSpec((row_width, row_width), lambda s, bt: (0, 0)))
    operands += [ys2, yw2]
    in_specs += [
        # Only the active branch's input advances; the other stays on block 0 (no re-DMA).
        pl.BlockSpec((TB, row_width), lambda s, bt: (bt * (1 - s), 0)),   # strong (s == 0)
        pl.BlockSpec((TB, row_width), lambda s, bt: (bt * s, 0)),         # weak   (s == 1)
    ]

    # Per-branch accumulator outputs; 8 (redundant) sublanes keep the block layout-legal.
    out_shapes = (jax.ShapeDtypeStruct((2, 8, row_width), jnp.float32),
                  jax.ShapeDtypeStruct((2, 8, row_width), jnp.float32))
    out_specs = (pl.BlockSpec((1, 8, row_width), lambda s, bt: (s, 0, 0)),
                 pl.BlockSpec((1, 8, row_width), lambda s, bt: (s, 0, 0)))

    a_out, sq_out = pl.pallas_call(
        kernel,
        out_shape=out_shapes,
        grid_spec=pltpu.PrefetchScalarGridSpec(
            num_scalar_prefetch=0,
            grid=(2, nbt),                              # (branch, row-tile)
            in_specs=in_specs,
            out_specs=out_specs,
        ),
        compiler_params=pltpu.CompilerParams(
            # Branch axis is parallel -> each v7x TensorCore takes one branch; every
            # branch's accumulation is self-contained (init at bt==0 into its own output
            # block), so this is safe under core sharding.  No effect on v5e/v6e.
            dimension_semantics=("parallel", "arbitrary"),
            vmem_limit_bytes=(cap * 4) // 5,
        ),
    )(*operands)

    # Tiny scalar finalize in JAX (per review: keep it out of the kernel).
    a = a_out[:, 0, :]                                   # (2, row_width)
    sq = sq_out[:, 0, :]
    if R > 1:
        a = a.reshape(2, R, C).sum(axis=1)               # fold packed rows back to classes
        sq = sq.reshape(2, R, C).sum(axis=1)
    ratio = jnp.where(a > 0.0, sq / a, 0.0)              # guard the a==0 corner (ref -> NaN)
    trace = jnp.sum(ratio, axis=-1)                      # (2,)
    per = 2.0 * (jnp.float32(C) - trace) / jnp.float32(C * C)
    return per[0] * jnp.float32(0.1) + per[1]


def lerm_ref(y_strong, y):
    """Plain-JAX reference mirroring the PyTorch module (explicit Gram-matrix path)."""
    def branch(logits):
        p = jax.nn.softmax(logits.astype(jnp.float32), axis=1)
        a = jnp.sum(p, axis=0)
        H = jnp.dot(p.T, p, precision=lax.Precision.HIGHEST)
        Hn = (H.T / a).T
        eye = jnp.eye(H.shape[0], dtype=jnp.float32)
        return jnp.mean(jnp.abs(Hn - eye))
    return branch(y_strong) * 0.1 + branch(y)


if __name__ == "__main__":
    key = jax.random.PRNGKey(0)
    k1, k2, k3, k4, k5, k6, k7, k8 = jax.random.split(key, 8)

    # 1) Module-scale case: (minibatch=8, C=16).  Small-B fallback path, single tile.
    ys = jax.random.normal(k1, (8, 16), jnp.float32)
    yw = jax.random.normal(k2, (8, 16), jnp.float32)
    out = jax.block_until_ready(lerm(ys, yw))
    ref = jax.block_until_ready(lerm_ref(ys, yw))
    assert jnp.allclose(out, ref, rtol=1e-5, atol=1e-5), (out, ref)

    # 2) Unpacked fallback (B % 8 != 0): multi-tile + partial-last-tile row masking.
    ys = jax.random.normal(k3, (50, 16), jnp.float32)
    yw = jax.random.normal(k4, (50, 16), jnp.float32)
    out = jax.block_until_ready(lerm(ys, yw, tb=16))
    ref = jax.block_until_ready(lerm_ref(ys, yw))
    assert jnp.allclose(out, ref, rtol=1e-5, atol=1e-5), (out, ref)

    # 3) Lane-packed path (C=16 -> R=8), multi-tile with a non-dividing tile (masked).
    ys = jax.random.normal(k5, (320, 16), jnp.float32)
    yw = jax.random.normal(k6, (320, 16), jnp.float32)
    out = jax.block_until_ready(lerm(ys, yw, tb=16))
    ref = jax.block_until_ready(lerm_ref(ys, yw))
    assert jnp.allclose(out, ref, rtol=1e-5, atol=1e-5), (out, ref)

    # 4) C >= 128 (no packing) with bf16 logits (kernel upcasts in VMEM; halves HBM bytes).
    ys = jax.random.normal(k7, (64, 256), jnp.float32).astype(jnp.bfloat16)
    yw = jax.random.normal(k8, (64, 256), jnp.float32).astype(jnp.bfloat16)
    out = jax.block_until_ready(lerm(ys, yw))
    ref = jax.block_until_ready(lerm_ref(ys, yw))
    assert jnp.allclose(out, ref, rtol=1e-5, atol=1e-5), (out, ref)

    print("KERNEL_OK")
</pallas_src>

<mosaic_0001>
module attributes {stable_mosaic.version = 11 : i64} {
  func.func @_lerm_kernel(%arg0: i32, %arg1: i32, %arg2: memref<8x16xf32, #tpu.memory_space<vmem>>, %arg3: memref<8x16xf32, #tpu.memory_space<vmem>>, %arg4: memref<1x8x16xf32, #tpu.memory_space<vmem>>, %arg5: memref<1x8x16xf32, #tpu.memory_space<vmem>>) attributes {dimension_semantics = [#tpu.dimension_semantics<parallel>, #tpu.dimension_semantics<arbitrary>], iteration_bounds = array<i64: 2, 1>, scalar_prefetch = 0 : i64, scratch_operands = 0 : i64, tpu.core_type = #tpu.core_type<tc>, window_params = [{transform_indices = @transform_0, window_bounds = array<i64: 8, 16>}, {transform_indices = @transform_1, window_bounds = array<i64: 8, 16>}, {transform_indices = @transform_2, window_bounds = array<i64: 1, 8, 16>}, {transform_indices = @transform_3, window_bounds = array<i64: 1, 8, 16>}]} {
    %c0_i32 = arith.constant 0 : i32
    %0 = arith.cmpi eq, %arg1, %c0_i32 : i32
    %1 = arith.extui %0 : i1 to i32
    %c0_i32_0 = arith.constant 0 : i32
    %2 = arith.cmpi ne, %1, %c0_i32_0 : i32
    scf.if %2 {
      %cst = arith.constant 0.000000e+00 : f32
      %9 = vector.broadcast %cst : f32 to vector<1x8x16xf32>
      %c0 = arith.constant 0 : index
      %c0_4 = arith.constant 0 : index
      %c0_5 = arith.constant 0 : index
      %10 = vector.load %arg4[%c0, %c0_4, %c0_5] : memref<1x8x16xf32, #tpu.memory_space<vmem>>, vector<1x8x16xf32>
      tpu.vector_store %arg4[%c0, %c0_4, %c0_5], %9 {strides = array<i32>} : memref<1x8x16xf32, #tpu.memory_space<vmem>>, vector<1x8x16xf32>,
      %cst_6 = arith.constant 0.000000e+00 : f32
      %11 = vector.broadcast %cst_6 : f32 to vector<1x8x16xf32>
      %c0_7 = arith.constant 0 : index
      %c0_8 = arith.constant 0 : index
      %c0_9 = arith.constant 0 : index
      %12 = vector.load %arg5[%c0_7, %c0_8, %c0_9] : memref<1x8x16xf32, #tpu.memory_space<vmem>>, vector<1x8x16xf32>
      tpu.vector_store %arg5[%c0_7, %c0_8, %c0_9], %11 {strides = array<i32>} : memref<1x8x16xf32, #tpu.memory_space<vmem>>, vector<1x8x16xf32>,
    } else {
    }
    %c0_i32_1 = arith.constant 0 : i32
    %3 = arith.cmpi eq, %arg0, %c0_i32_1 : i32
    %4 = arith.extui %3 : i1 to i32
    %c0_i32_2 = arith.constant 0 : i32
    %5 = arith.cmpi ne, %4, %c0_i32_2 : i32
    scf.if %5 {
      %c0 = arith.constant 0 : index
      %c0_4 = arith.constant 0 : index
      %9 = vector.load %arg2[%c0, %c0_4] : memref<8x16xf32, #tpu.memory_space<vmem>>, vector<8x16xf32>
      %cst = arith.constant dense<0xFF800000> : vector<8xf32>
      %10 = vector.multi_reduction <maximumf>, %9, %cst [1] : vector<8x16xf32> to vector<8xf32>
      %11 = vector.shape_cast %10 : vector<8xf32> to vector<8x1xf32>
      %12 = vector.broadcast %11 : vector<8x1xf32> to vector<8x16xf32>
      %13 = arith.subf %9, %12 : vector<8x16xf32>
      %14 = math.exp %13 : vector<8x16xf32>
      %cst_5 = arith.constant dense<0.000000e+00> : vector<8xf32>
      %15 = vector.multi_reduction <add>, %14, %cst_5 [1] : vector<8x16xf32> to vector<8xf32>
      %16 = vector.shape_cast %15 : vector<8xf32> to vector<8x1xf32>
      %cst_6 = arith.constant 1.000000e+00 : f32
      %17 = vector.broadcast %cst_6 : f32 to vector<8x1xf32>
      %18 = arith.divf %17, %16 : vector<8x1xf32>
      %19 = vector.broadcast %18 : vector<8x1xf32> to vector<8x16xf32>
      %20 = arith.mulf %14, %19 : vector<8x16xf32>
      %cst_7 = arith.constant dense<0.000000e+00> : vector<16xf32>
      %21 = vector.multi_reduction <add>, %20, %cst_7 [0] : vector<8x16xf32> to vector<16xf32>
      %22 = vector.shape_cast %21 : vector<16xf32> to vector<1x16xf32>
      %23 = vector.shape_cast %22 : vector<1x16xf32> to vector<1x1x16xf32>
      %24 = arith.mulf %20, %20 : vector<8x16xf32>
      %cst_8 = arith.constant dense<0.000000e+00> : vector<16xf32>
      %25 = vector.multi_reduction <add>, %24, %cst_8 [0] : vector<8x16xf32> to vector<16xf32>
      %26 = vector.shape_cast %25 : vector<16xf32> to vector<1x16xf32>
      %27 = vector.shape_cast %26 : vector<1x16xf32> to vector<1x1x16xf32>
      %c0_9 = arith.constant 0 : index
      %c0_10 = arith.constant 0 : index
      %c0_11 = arith.constant 0 : index
      %28 = vector.load %arg4[%c0_9, %c0_10, %c0_11] : memref<1x8x16xf32, #tpu.memory_space<vmem>>, vector<1x8x16xf32>
      %29 = vector.shape_cast %23 : vector<1x1x16xf32> to vector<1x1x16xf32>
      %30 = vector.broadcast %29 : vector<1x1x16xf32> to vector<1x8x16xf32>
      %31 = arith.addf %28, %30 : vector<1x8x16xf32>
      %c0_12 = arith.constant 0 : index
      %c0_13 = arith.constant 0 : index
      %c0_14 = arith.constant 0 : index
      %32 = vector.load %arg4[%c0_12, %c0_13, %c0_14] : memref<1x8x16xf32, #tpu.memory_space<vmem>>, vector<1x8x16xf32>
      tpu.vector_store %arg4[%c0_12, %c0_13, %c0_14], %31 {strides = array<i32>} : memref<1x8x16xf32, #tpu.memory_space<vmem>>, vector<1x8x16xf32>,
      %c0_15 = arith.constant 0 : index
      %c0_16 = arith.constant 0 : index
      %c0_17 = arith.constant 0 : index
      %33 = vector.load %arg5[%c0_15, %c0_16, %c0_17] : memref<1x8x16xf32, #tpu.memory_space<vmem>>, vector<1x8x16xf32>
      %34 = vector.shape_cast %27 : vector<1x1x16xf32> to vector<1x1x16xf32>
      %35 = vector.broadcast %34 : vector<1x1x16xf32> to vector<1x8x16xf32>
      %36 = arith.addf %33, %35 : vector<1x8x16xf32>
      %c0_18 = arith.constant 0 : index
      %c0_19 = arith.constant 0 : index
      %c0_20 = arith.constant 0 : index
      %37 = vector.load %arg5[%c0_18, %c0_19, %c0_20] : memref<1x8x16xf32, #tpu.memory_space<vmem>>, vector<1x8x16xf32>
      tpu.vector_store %arg5[%c0_18, %c0_19, %c0_20], %36 {strides = array<i32>} : memref<1x8x16xf32, #tpu.memory_space<vmem>>, vector<1x8x16xf32>,
    } else {
    }
    %c1_i32 = arith.constant 1 : i32
    %6 = arith.cmpi eq, %arg0, %c1_i32 : i32
    %7 = arith.extui %6 : i1 to i32
    %c0_i32_3 = arith.constant 0 : i32
    %8 = arith.cmpi ne, %7, %c0_i32_3 : i32
    scf.if %8 {
      %c0 = arith.constant 0 : index
      %c0_4 = arith.constant 0 : index
      %9 = vector.load %arg3[%c0, %c0_4] : memref<8x16xf32, #tpu.memory_space<vmem>>, vector<8x16xf32>
      %cst = arith.constant dense<0xFF800000> : vector<8xf32>
      %10 = vector.multi_reduction <maximumf>, %9, %cst [1] : vector<8x16xf32> to vector<8xf32>
      %11 = vector.shape_cast %10 : vector<8xf32> to vector<8x1xf32>
      %12 = vector.broadcast %11 : vector<8x1xf32> to vector<8x16xf32>
      %13 = arith.subf %9, %12 : vector<8x16xf32>
      %14 = math.exp %13 : vector<8x16xf32>
      %cst_5 = arith.constant dense<0.000000e+00> : vector<8xf32>
      %15 = vector.multi_reduction <add>, %14, %cst_5 [1] : vector<8x16xf32> to vector<8xf32>
      %16 = vector.shape_cast %15 : vector<8xf32> to vector<8x1xf32>
      %cst_6 = arith.constant 1.000000e+00 : f32
      %17 = vector.broadcast %cst_6 : f32 to vector<8x1xf32>
      %18 = arith.divf %17, %16 : vector<8x1xf32>
      %19 = vector.broadcast %18 : vector<8x1xf32> to vector<8x16xf32>
      %20 = arith.mulf %14, %19 : vector<8x16xf32>
      %cst_7 = arith.constant dense<0.000000e+00> : vector<16xf32>
      %21 = vector.multi_reduction <add>, %20, %cst_7 [0] : vector<8x16xf32> to vector<16xf32>
      %22 = vector.shape_cast %21 : vector<16xf32> to vector<1x16xf32>
      %23 = vector.shape_cast %22 : vector<1x16xf32> to vector<1x1x16xf32>
      %24 = arith.mulf %20, %20 : vector<8x16xf32>
      %cst_8 = arith.constant dense<0.000000e+00> : vector<16xf32>
      %25 = vector.multi_reduction <add>, %24, %cst_8 [0] : vector<8x16xf32> to vector<16xf32>
      %26 = vector.shape_cast %25 : vector<16xf32> to vector<1x16xf32>
      %27 = vector.shape_cast %26 : vector<1x16xf32> to vector<1x1x16xf32>
      %c0_9 = arith.constant 0 : index
      %c0_10 = arith.constant 0 : index
      %c0_11 = arith.constant 0 : index
      %28 = vector.load %arg4[%c0_9, %c0_10, %c0_11] : memref<1x8x16xf32, #tpu.memory_space<vmem>>, vector<1x8x16xf32>
      %29 = vector.shape_cast %23 : vector<1x1x16xf32> to vector<1x1x16xf32>
      %30 = vector.broadcast %29 : vector<1x1x16xf32> to vector<1x8x16xf32>
      %31 = arith.addf %28, %30 : vector<1x8x16xf32>
      %c0_12 = arith.constant 0 : index
      %c0_13 = arith.constant 0 : index
      %c0_14 = arith.constant 0 : index
      %32 = vector.load %arg4[%c0_12, %c0_13, %c0_14] : memref<1x8x16xf32, #tpu.memory_space<vmem>>, vector<1x8x16xf32>
      tpu.vector_store %arg4[%c0_12, %c0_13, %c0_14], %31 {strides = array<i32>} : memref<1x8x16xf32, #tpu.memory_space<vmem>>, vector<1x8x16xf32>,
      %c0_15 = arith.constant 0 : index
      %c0_16 = arith.constant 0 : index
      %c0_17 = arith.constant 0 : index
      %33 = vector.load %arg5[%c0_15, %c0_16, %c0_17] : memref<1x8x16xf32, #tpu.memory_space<vmem>>, vector<1x8x16xf32>
      %34 = vector.shape_cast %27 : vector<1x1x16xf32> to vector<1x1x16xf32>
      %35 = vector.broadcast %34 : vector<1x1x16xf32> to vector<1x8x16xf32>
      %36 = arith.addf %33, %35 : vector<1x8x16xf32>
      %c0_18 = arith.constant 0 : index
      %c0_19 = arith.constant 0 : index
      %c0_20 = arith.constant 0 : index
      %37 = vector.load %arg5[%c0_18, %c0_19, %c0_20] : memref<1x8x16xf32, #tpu.memory_space<vmem>>, vector<1x8x16xf32>
      tpu.vector_store %arg5[%c0_18, %c0_19, %c0_20], %36 {strides = array<i32>} : memref<1x8x16xf32, #tpu.memory_space<vmem>>, vector<1x8x16xf32>,
    } else {
    }
    return
  }
  func.func @transform_0(%arg0: i32, %arg1: i32) -> (i32, i32) {
    %c1_i32 = arith.constant 1 : i32
    %0 = arith.subi %c1_i32, %arg0 : i32
    %1 = arith.muli %arg1, %0 : i32
    %c0_i32 = arith.constant 0 : i32
    %c0_i32_0 = arith.constant 0 : i32
    return %1, %c0_i32 : i32, i32
  }
  func.func @transform_1(%arg0: i32, %arg1: i32) -> (i32, i32) {
    %0 = arith.muli %arg1, %arg0 : i32
    %c0_i32 = arith.constant 0 : i32
    %c0_i32_0 = arith.constant 0 : i32
    return %0, %c0_i32 : i32, i32
  }
  func.func @transform_2(%arg0: i32, %arg1: i32) -> (i32, i32, i32) {
    %c0_i32 = arith.constant 0 : i32
    %c0_i32_0 = arith.constant 0 : i32
    %c0_i32_1 = arith.constant 0 : i32
    return %arg0, %c0_i32, %c0_i32_0 : i32, i32, i32
  }
  func.func @transform_3(%arg0: i32, %arg1: i32) -> (i32, i32, i32) {
    %c0_i32 = arith.constant 0 : i32
    %c0_i32_0 = arith.constant 0 : i32
    %c0_i32_1 = arith.constant 0 : i32
    return %arg0, %c0_i32, %c0_i32_0 : i32, i32, i32
  }
}

</mosaic_0001>

<bundles_post_ra>
// kernel: tpu_custom_call.1
= control target key start
LH: loop header
LB: loop body
LE: loop exit
PB: predicated region body
PF: predicated region fallthrough
CT: control target
= control target key end

     0   :  { %9 = vsyncpa [#allocation3], 0  ;;  %s1011_s0 = inlined_call_operand.hbm [shape: f32[8,16], index: 0, kind: input, shape index: {}]   ;;  %s1012_s1 = inlined_call_operand.hbm [shape: f32[8,16], index: 1, kind: input, shape index: {}]   ;;  %s1013_s2 = inlined_call_operand.hbm [shape: f32[2,8,16], index: 2, kind: output, shape index: {0}]   ;;  %s1014_s3 = inlined_call_operand.hbm [shape: f32[2,8,16], index: 3, kind: output, shape index: {1}]  }
   0x1   :  { %11 = vsyncpa [#allocation3 + $0x1], 0 }
   0x2   :  { %12 = vsyncpa [#allocation6], 0 }
   0x3   :  { %14 = vsyncpa [#allocation6 + $0x1], 0 }
   0x4   :  { %15 = vsyncpa [#allocation4], 0 }
   0x5   :  { %17 = vsyncpa [#allocation4 + $0x1], 0 }
   0x6   :  { %18 = vsyncpa [#allocation9], 0 }
   0x7   :  { %20 = vsyncpa [#allocation9 + $0x1], 0  ;;  %s855_s12 = smov 0   ;;  %s857_s13 = smov 0  }
   0x8   :  { %s859_s14 = smov 0   ;;  %s861_s15 = smov 0  }
   0x9   :  { %s863_s16 = smov 0   ;;  %s865_s17 = smov 0  }
   0xa LB: > { %s542_s18 = sadd.s32 4294967295, %s830_s17   ;;  %s543_s19 = sadd.s32 4294967294, %s830_s17   ;;  %s830_s17 = sphi %s865_s17, %s26_s17   ;;  %s826_s16 = sphi %s863_s16, %s1021_s16   ;;  %s822_s15 = sphi %s861_s15, %s1020_s15   ;;  %s818_s14 = sphi %s859_s14, %s1019_s14   ;;  %s814_s13 = sphi %s857_s13, %s1018_s13   ;;  %s810_s12 = sphi %s855_s12, %s1017_s12  }
   0xb   : > { %s38_s20 = sadd.s32 1, %s826_s16  ;;  %s103_s21 = sadd.s32 1, %s818_s14 }
   0xc   : > { %p40_p0 = scmp.ge.s32.totalorder %s38_s20, 2  ;;  %p113_p1 = scmp.ne.s32.totalorder %s818_s14, %s814_s13 }
   0xd   : > { %p114_p2 = scmp.eq.s32.totalorder %s542_s18, 1  ;;  %p119_p3 = scmp.ne.s32.totalorder %s814_s13, %s810_s12 }
   0xe   : > { %s1023_s20 = smov (%p40_p0, %s38_s20), 0  ;;  %p120_p5 = scmp.eq.s32.totalorder %s543_s19, 1 }
   0xf   : > { %p897_p4 = por %p114_p2, %p113_p1  ;;  %s100_s23 = ssub.s32 %s826_s16, %s1023_s20 }
  0x10   : > { %p545_p6 = scmp.ge.s32.totalorder %s830_s17, 2  ;;  %p101_p7 = scmp.eq.s32.totalorder %s100_s23, 0 }
  0x11   : > { %p904_p8 = por %p120_p5, %p119_p3  ;;  %p587_p9 = scmp.lt.s32.totalorder %s830_s17, 2 }
  0x12   : > { %s910_s25 = scalar_select %p101_p7, %s818_s14, %s103_s21  }
  0x13   : > { %p588_p10 = scmp.eq.s32.totalorder %s830_s17, 0  ;;  %s178_s28 = sshll.u32 %s1011_s0, 4  ;;  %s179_s28 = int_to_ptr.hbm [resolvable:$true] %s178_s28 }
  0x14   : > { %s832_s29 = smov [#allocation2]   ;;  %p548_p12 = scmp.ge.s32.totalorder %s830_s17, 1 }
  0x15   : > { %s180_s30 = sshll.u32 %s832_s29, 4  ;;  %p574_p11 = pnand %p588_p10, %p587_p9  ;;  %s181_s30 = int_to_ptr.vmem [resolvable:$true] %s180_s30 }
  0x16   : > { %p205_p13 = scmp.lt.s32.totalorder %s830_s17, 3  ;;  %s198_s6 = sshll.u32 %s1012_s1, 4  ;;  %s199_s6 = int_to_ptr.hbm [resolvable:$true] %s198_s6 }
  0x17   : > { %576 = dma.hbm_to_vmem [thread:$0]  (!%p574_p11), %s179_s28, 128, %s181_s30, [#allocation3]  }
  0x18   : > { %p206_p0 = pnand %p548_p12, %p205_p13  ;;  %s833_s7 = smov [#allocation5]  }
  0x19   : > { %s200_s8 = sshll.u32 %s833_s7, 4  ;;  %p590_p1 = scmp.eq.s32.totalorder (!%p206_p0), %s542_s18, 0  ;;  %s201_s8 = int_to_ptr.vmem [resolvable:$true] %s200_s8 }
  0x1a   : > { %579 = dma.hbm_to_vmem [thread:$0]  (!%p574_p11), %s199_s6, 128, %s201_s8, [#allocation6]  }
  0x1b   : > { %209 = sbr.rel (%p206_p0) target bundleno = 645 (0x285), region = 28 }
  0x20   : > { %793 = dma.done.wait (%p590_p1), [#allocation3], 128  }
  0x21   : > { %795 = vsyncadd (%p590_p1), [#allocation3], 4294967168 }
  0x22   : > { %797 = dma.done.wait (%p590_p1), [#allocation6], 128  }
  0x23   : > { %799 = vsyncadd (%p590_p1), [#allocation6], 4294967168  ;;  %s924_s9 = sand.u32 1, %s814_s13   ;;  %vm266_vm0 = vcmask 130048   ;;  %v834_v0 = vmov 0.0   ;;  %p553_p2 = scmp.ne.s32.totalorder %s822_s15, 0 }
  0x24   : > { %s551_s10 = sshll.u32 %s924_s9, 3 }
  0x25   : > { %s927_s11 = scalar_lea.vmem [#allocation7], %s551_s10  ;;  %s931_s19 = scalar_lea.vmem [#allocation8], %s551_s10 }
  0x26   : > { %267 = vst.msk [vmem:[%s927_s11] sm:$0xff] %vm266_vm0, %v834_v0  ;;  %272 = sbr.rel (%p553_p2) target bundleno = 326 (0x146), region = 44 }
  0x27   : > { %268 = vst.msk [vmem:[%s931_s19] sm:$0xff] %vm266_vm0, %v834_v0 }
  0x2b   : > { %v273_v1 = vld [vmem:[#allocation2] sm:$0xff] }
  0x2c   : > { %v275_v2 = vsel %vm266_vm0, %v273_v1, -inf }
  0x2d   : > { %276 = vmax.xlane.f32.xlu0 %v275_v2  ;;  %v315_v32 = vld [vmem:[%s927_s11] sm:$0xff] }
  0x2e   : > { %v318_v35 = vld [vmem:[%s931_s19] sm:$0xff] }
  0xa0   : > { %v277_v3 = vpop.xlane.xlu0 %276 }
  0xa1   : > { %v278_v4 = vsub.f32 %v273_v1, %v277_v3 }
  0xa3   : > { %v279_v5 = vmul.f32 1.442695, %v278_v4 }
  0xa5   : > { %644 = vpow2.f32 %v279_v5 }
  0xab   : > { %v645_v6 = vpop.eup %644 }
  0xac   : > { %v281_v7 = vsel %vm266_vm0, %v645_v6, 0.0 }
  0xad   : > { %282 = vadd.xlane.f32.xlu0 %v281_v7 }
 0x120   : > { %v283_v8 = vpop.xlane.xlu0 %282 }
 0x121   : > { %646 = vrcp.f32 %v283_v8  ;;  %v295_v12 = vand.u32 2147483648, %v283_v8  ;;  %v293_v14 = vand.u32 2147483647, %v283_v8  ;;  %vm289_vm2 = vweird.f32 %v283_v8 }
 0x123   : > { %v296_v16 = vor.u32 1.1754944e-38, %v295_v12  ;;  %vm294_vm4 = vcmp.eq.f32.partialorder %v293_v14, 8.507059e+37 }
 0x127   : > { %v647_v9 = vpop.eup %646 }
 0x128   : > { %v285_v10 = vmul.f32 %v647_v9, %v283_v8  ;;  %vm290_vm1 = vweird.f32 %v647_v9 }
 0x129   : > { %vm291_vm3 = vmor %vm289_vm2, %vm290_vm1 }
 0x12a   : > { %v286_v11 = vsub.f32 1.0, %v285_v10 }
 0x12c   : > { %v287_v13 = vmul.f32 %v647_v9, %v286_v11 }
 0x12e   : > { %v288_v15 = vadd.f32 %v647_v9, %v287_v13 }
 0x130   : > { %v292_v17 = vsel %vm291_vm3, %v647_v9, %v288_v15 }
 0x131   : > { %v297_v18 = vsel %vm294_vm4, %v296_v16, %v292_v17 }
 0x132   : > { %v299_v19 = vmul.f32 %v645_v6, %v297_v18 }
 0x134   : > { %v300_v20 = vsel %vm266_vm0, %v299_v19, 0.0  ;;  %v307_v21 = vmul.f32 %v299_v19, %v299_v19 }
 0x135   : > { %v301_v22 = vrot.slane %v300_v20, 4 }
 0x136   : > { %v308_v23 = vsel %vm266_vm0, %v307_v21, 0.0 }
 0x137   : > { %v302_v24 = vadd.f32 %v301_v22, %v300_v20  ;;  %v309_v25 = vrot.slane %v308_v23, 4 }
 0x139   : > { %v303_v26 = vrot.slane %v302_v24, 2  ;;  %v310_v27 = vadd.f32 %v309_v25, %v308_v23 }
 0x13b   : > { %v304_v28 = vadd.f32 %v303_v26, %v302_v24  ;;  %v311_v29 = vrot.slane %v310_v27, 2 }
 0x13d   : > { %v305_v30 = vrot.slane %v304_v28, 1  ;;  %v312_v31 = vadd.f32 %v311_v29, %v310_v27 }
 0x13f   : > { %v306_v33 = vadd.f32 %v305_v30, %v304_v28  ;;  %v313_v34 = vrot.slane %v312_v31, 1 }
 0x141   : > { %v314_v36 = vadd.f32 %v313_v34, %v312_v31  ;;  %v316_v37 = vadd.f32 %v315_v32, %v306_v33 }
 0x143   : > { %317 = vst.msk [vmem:[%s927_s11] sm:$0xff] %vm266_vm0, %v316_v37  ;;  %v319_v38 = vadd.f32 %v318_v35, %v314_v36 }
 0x145   : > { %320 = vst.msk [vmem:[%s931_s19] sm:$0xff] %vm266_vm0, %v319_v38 }
 0x146 PF: > { %p554_p3 = scmp.ne.s32.totalorder %s822_s15, 1 }
 0x148   : > { %324 = sbr.rel (%p554_p3) target bundleno = 616 (0x268), region = 48 }
 0x14d   : > { %v325_v39 = vld [vmem:[#allocation5] sm:$0xff]  ;;  %v367_v6 = vld [vmem:[%s927_s11] sm:$0xff] }
 0x14e   : > { %v327_v40 = vsel %vm266_vm0, %v325_v39, -inf  ;;  %v370_v9 = vld [vmem:[%s931_s19] sm:$0xff] }
 0x14f   : > { %328 = vmax.xlane.f32.xlu0 %v327_v40 }
 0x1c2   : > { %v329_v41 = vpop.xlane.xlu0 %328 }
 0x1c3   : > { %v330_v42 = vsub.f32 %v325_v39, %v329_v41 }
 0x1c5   : > { %v331_v43 = vmul.f32 1.442695, %v330_v42 }
 0x1c7   : > { %648 = vpow2.f32 %v331_v43 }
 0x1cd   : > { %v649_v44 = vpop.eup %648 }
 0x1ce   : > { %v333_v45 = vsel %vm266_vm0, %v649_v44, 0.0 }
 0x1cf   : > { %334 = vadd.xlane.f32.xlu0 %v333_v45 }
 0x242   : > { %v335_v46 = vpop.xlane.xlu0 %334 }
 0x243   : > { %650 = vrcp.f32 %v335_v46  ;;  %v347_v50 = vand.u32 2147483648, %v335_v46  ;;  %v345_v52 = vand.u32 2147483647, %v335_v46  ;;  %vm341_vm6 = vweird.f32 %v335_v46 }
 0x245   : > { %v348_v54 = vor.u32 1.1754944e-38, %v347_v50  ;;  %vm346_vm8 = vcmp.eq.f32.partialorder %v345_v52, 8.507059e+37 }
 0x249   : > { %v651_v47 = vpop.eup %650 }
 0x24a   : > { %v337_v48 = vmul.f32 %v651_v47, %v335_v46  ;;  %vm342_vm5 = vweird.f32 %v651_v47 }
 0x24b   : > { %vm343_vm7 = vmor %vm341_vm6, %vm342_vm5 }
 0x24c   : > { %v338_v49 = vsub.f32 1.0, %v337_v48 }
 0x24e   : > { %v339_v51 = vmul.f32 %v651_v47, %v338_v49 }
 0x250   : > { %v340_v53 = vadd.f32 %v651_v47, %v339_v51 }
 0x252   : > { %v344_v55 = vsel %vm343_vm7, %v651_v47, %v340_v53 }
 0x253   : > { %v349_v56 = vsel %vm346_vm8, %v348_v54, %v344_v55 }
 0x254   : > { %v351_v57 = vmul.f32 %v649_v44, %v349_v56 }
 0x256   : > { %v352_v58 = vsel %vm266_vm0, %v351_v57, 0.0  ;;  %v359_v59 = vmul.f32 %v351_v57, %v351_v57 }
 0x257   : > { %v353_v60 = vrot.slane %v352_v58, 4 }
 0x258   : > { %v360_v61 = vsel %vm266_vm0, %v359_v59, 0.0 }
 0x259   : > { %v354_v62 = vadd.f32 %v353_v60, %v352_v58  ;;  %v361_v63 = vrot.slane %v360_v61, 4 }
 0x25b   : > { %v355_v0 = vrot.slane %v354_v62, 2  ;;  %v362_v1 = vadd.f32 %v361_v63, %v360_v61 }
 0x25d   : > { %v356_v2 = vadd.f32 %v355_v0, %v354_v62  ;;  %v363_v3 = vrot.slane %v362_v1, 2 }
 0x25f   : > { %v357_v4 = vrot.slane %v356_v2, 1  ;;  %v364_v5 = vadd.f32 %v363_v3, %v362_v1 }
 0x261   : > { %v358_v7 = vadd.f32 %v357_v4, %v356_v2  ;;  %v365_v8 = vrot.slane %v364_v5, 1 }
 0x263   : > { %v366_v10 = vadd.f32 %v365_v8, %v364_v5  ;;  %v368_v11 = vadd.f32 %v367_v6, %v358_v7 }
 0x265   : > { %369 = vst.msk [vmem:[%s927_s11] sm:$0xff] %vm266_vm0, %v368_v11  ;;  %v371_v12 = vadd.f32 %v370_v9, %v366_v10 }
 0x267   : > { %372 = vst.msk [vmem:[%s931_s19] sm:$0xff] %vm266_vm0, %v371_v12 }
 0x268 PF: > { %s557_s18 = sshll.u32 %s822_s15, 3  ;;  %s391_s27 = sshll.u32 %s927_s11, 4  ;;  %s392_s27 = int_to_ptr.vmem [resolvable:$true] %s391_s27 }
 0x269   : > { %s389_s26 = scalar_lea.hbm %s1013_s2, %s557_s18  ;;  %s374_s29 = scalar_lea.sflag [#allocation4], %s924_s9 }
 0x26a   : > { %s393_s28 = sshll.u32 %s389_s26, 4  ;;  %s732_s15 = scalar_lea.hbm %s1013_s2, 16  ;;  %s394_s28 = int_to_ptr.hbm [resolvable:$true] %s393_s28 }
 0x26b   : > { %s726_s30 = sshra.s32 %s394_s28, 4  ;;  %s727_s30 = int_to_ptr.hbm [resolvable:$true] %s726_s30 }
 0x26c   : > { %s728_s4 = scalar_lea.hbm %s727_s30, 8  ;;  %p733_p10 = scmp.lt.s32.totalorder %s727_s30, %s1013_s2 }
 0x26d   : > { %p729_p5 = scmp.ne.s32.totalorder %s727_s30, %s728_s4  ;;  %p734_p11 = scmp.lt.s32.totalorder %s732_s15, %s728_s4 }
 0x26f   : > { %p730_p7 = pnand %p729_p5, %p897_p4  ;;  %p735_p12 = por %p734_p11, %p733_p10 }
 0x271   : > { %p731_p9 = pneg %p730_p7 }
 0x273   : > { %p736_p13 = pnand %p735_p12, %p731_p9 }
 0x275   : > { %739 = shalt.err (!%p736_p13)
}
 0x276   : > { %569 = dma.vmem_to_hbm [thread:$0]  (%p897_p4), %s392_s27, 128, %s394_s28, %s374_s29  }
 0x277   : > { %s403_s21 = scalar_lea.hbm %s1014_s3, %s557_s18  ;;  %s405_s23 = sshll.u32 %s931_s19, 4  ;;  %s406_s23 = int_to_ptr.vmem [resolvable:$true] %s405_s23 }
 0x278   : > { %s407_s26 = sshll.u32 %s403_s21, 4  ;;  %s379_s5 = scalar_lea.sflag [#allocation9], %s924_s9  ;;  %s408_s26 = int_to_ptr.hbm [resolvable:$true] %s407_s26 }
 0x279   : > { %s754_s30 = sshra.s32 %s408_s26, 4  ;;  %s760_s27 = scalar_lea.hbm %s1014_s3, 16  ;;  %s755_s30 = int_to_ptr.hbm [resolvable:$true] %s754_s30 }
 0x27a   : > { %s756_s4 = scalar_lea.hbm %s755_s30, 8  ;;  %p761_p3 = scmp.lt.s32.totalorder %s755_s30, %s1014_s3 }
 0x27b   : > { %p757_p0 = scmp.ne.s32.totalorder %s755_s30, %s756_s4  ;;  %p762_p5 = scmp.lt.s32.totalorder %s760_s27, %s756_s4 }
 0x27d   : > { %p758_p1 = pnand %p757_p0, %p897_p4  ;;  %p763_p7 = por %p762_p5, %p761_p3 }
 0x27f   : > { %p759_p2 = pneg %p758_p1 }
 0x281   : > { %p764_p9 = pnand %p763_p7, %p759_p2 }
 0x283   : > { %767 = shalt.err (!%p764_p9)
}
 0x284   : > { %570 = dma.vmem_to_hbm [thread:$0]  (%p897_p4), %s406_s23, 128, %s408_s26, %s379_s5  }
 0x285 PF: > { %s419_s9 = sand.u32 1, %s810_s12   ;;  %p581_p10 = pnand %p545_p6, %p904_p8 }
 0x286   : > { %s420_s19 = scalar_lea.sflag [#allocation4], %s419_s9 }
 0x287   : > { %p582_p11 = pneg %p581_p10 }
 0x289   : > { %801 = dma.done.wait (%p582_p11), %s420_s19, 128  }
 0x28a   : > { %803 = vsyncadd (%p582_p11), %s420_s19, 4294967168  ;;  %s430_s18 = scalar_lea.sflag [#allocation9], %s419_s9 }
 0x28b   : > { %805 = dma.done.wait (%p582_p11), %s430_s18, 128  }
 0x28c   : > { %807 = vsyncadd (%p582_p11), %s430_s18, 4294967168  ;;  %s26_s17 = sadd.s32 1, %s830_s17   ;;  %s1017_s12 = smov %s814_s13 }
 0x28d   : > { %p23_p12 = scmp.ge.s32.totalorder %s26_s17, 4   ;;  %s1018_s13 = smov %s818_s14 }
 0x28e   : > { %s1019_s14 = smov %s910_s25  ;;  %s1020_s15 = smov %s826_s16 }
 0x28f   : > { %s1021_s16 = smov %s1023_s20  ;;  %25 = sbr.rel (!%p23_p12) target bundleno = 10 (0xa), region = 115 }
 0x294   :  { %436 = vsyncpa [#allocation3], 1 }
 0x295   :  { %438 = vsyncpa [#allocation3 + $0x1], 1 }
 0x296   :  { %439 = vsyncpa [#allocation6], 1 }
 0x297   :  { %441 = vsyncpa [#allocation6 + $0x1], 1 }
 0x298   :  { %442 = vsyncpa [#allocation4], 1 }
 0x299   :  { %444 = vsyncpa [#allocation4 + $0x1], 1 }
 0x29a   :  { %445 = vsyncpa [#allocation9], 1 }
 0x29b   :  { %447 = vsyncpa [#allocation9 + $0x1], 1 }

</bundles_post_ra>
